<compile_context>
chip_gen: v7x
topology: tpu7x:2x2x1
jax: 0.10.0
libtpu: 0.0.40
codegen_flags: <defaults>
</compile_context>

<pallas_src>
import jax
import jax.numpy as jnp
from jax.experimental import pallas as pl
from jax.experimental.pallas import tpu as pltpu

_LANE = 128
_SUBLANE = 8


def _swish_kernel(x_ref, o_ref):
    x = x_ref[...]
    xf = x.astype(jnp.float32)
    # sigmoid(x) = 0.5*(tanh(0.5*x)+1): one EUP transcendental per element.
    sig = 0.5 * (jnp.tanh(0.5 * xf) + 1.0)
    o_ref[...] = (xf * sig).astype(o_ref.dtype)


def _vmem_capacity_bytes() -> int:
    try:
        return int(pltpu.get_tpu_info().vmem_capacity_bytes)
    except Exception:
        return 64 << 20  # conservative fallback: v7x physical VMEM


def _swish_2d(x2d: jax.Array, *, target_block_bytes: int) -> jax.Array:
    """Runs the Swish kernel over a lane-dense (rows, lane_w) slab."""
    rows, lane_w = x2d.shape
    dtype = x2d.dtype
    itemsize = jnp.dtype(dtype).itemsize
    n = rows * lane_w

    # ---- generation-aware VMEM guardrail --------------------------------
    # Pipelined footprint = 2 input + 2 output double-buffers = 4 * block.
    vmem_cap = _vmem_capacity_bytes()
    max_total = min(vmem_cap // 8, 12 << 20)  # <=12 MiB total: safe under v5e's 16 MiB scoped default
    block_bytes = max(min(target_block_bytes, max_total // 4),
                      _SUBLANE * lane_w * itemsize)

    # ---- block sizing: sublane-aligned rows ------------------------------
    block_elems = block_bytes // itemsize
    tile_rows = max(_SUBLANE, (block_elems // lane_w) // _SUBLANE * _SUBLANE)

    total_bytes = n * itemsize
    if total_bytes > (1 << 20) and rows >= 2 * _SUBLANE:
        # Guarantee >= 2 grid steps so the "parallel" axis megacore-shards on
        # v7x and DMA overlaps compute on all generations.
        half_rows = ((pl.cdiv(rows, 2) + _SUBLANE - 1) // _SUBLANE) * _SUBLANE
        tile_rows = min(tile_rows, half_rows)
    if tile_rows >= rows:
        tile_rows = rows  # small tensor: single full-extent block (always legal)

    grid = (pl.cdiv(rows, tile_rows),)

    return pl.pallas_call(
        _swish_kernel,
        out_shape=jax.ShapeDtypeStruct((rows, lane_w), dtype),
        grid_spec=pltpu.PrefetchScalarGridSpec(
            num_scalar_prefetch=0,
            grid=grid,
            in_specs=[pl.BlockSpec((tile_rows, lane_w), lambda i: (i, 0))],
            out_specs=pl.BlockSpec((tile_rows, lane_w), lambda i: (i, 0)),
        ),
        compiler_params=pltpu.CompilerParams(
            dimension_semantics=("parallel",),  # megacore-shards grid steps on v7x
        ),
        cost_estimate=pl.CostEstimate(
            flops=3 * n, transcendentals=n, bytes_accessed=2 * n * itemsize),
    )(x2d)


def swish(x: jax.Array, *, target_block_bytes: int = 2 * 1024 * 1024) -> jax.Array:
    orig_shape = x.shape
    n = x.size
    if n == 0:
        return x

    # ---- fast path: lane-dense 2D slab, no pad / no slice ----------------
    lane_w = 0
    for w in (4096, 2048, 1024, 512, 256, _LANE):
        if n % w == 0:
            lane_w = w
            break

    if lane_w:
        x2d = jnp.reshape(x, (n // lane_w, lane_w))  # free: contiguous reshape
        out2d = _swish_2d(x2d, target_block_bytes=target_block_bytes)
        return out2d.reshape(orig_shape)

    # ---- ragged path: kernel on 128-aligned head, plain-JAX tail ---------
    flat = jnp.ravel(x)
    m = (n // _LANE) * _LANE
    tail_f32 = flat[m:].astype(jnp.float32)
    tail = (tail_f32 * (0.5 * (jnp.tanh(0.5 * tail_f32) + 1.0))).astype(x.dtype)
    if m == 0:
        return tail.reshape(orig_shape)
    head2d = _swish_2d(jnp.reshape(flat[:m], (m // _LANE, _LANE)),
                       target_block_bytes=target_block_bytes)
    return jnp.concatenate([head2d.reshape(-1), tail]).reshape(orig_shape)


if __name__ == "__main__":
    key = jax.random.PRNGKey(0)
    x = jax.random.normal(key, (2, 4, 16, 16), dtype=jnp.float32)  # NCHW activation

    y = swish(x)
    jax.block_until_ready(y)

    # Reference check (plain JAX)
    y_ref = x * jax.nn.sigmoid(x)
    assert y.shape == x.shape and y.dtype == x.dtype
    assert jnp.allclose(y, y_ref, atol=2e-6, rtol=2e-6)

    # Ragged-size path (tail fixup instead of pad+slice)
    x2 = jax.random.normal(jax.random.PRNGKey(1), (7, 131), dtype=jnp.float32)
    y2 = swish(x2)
    jax.block_until_ready(y2)
    assert jnp.allclose(y2, x2 * jax.nn.sigmoid(x2), atol=2e-6, rtol=2e-6)

    print("KERNEL_OK")
</pallas_src>

<mosaic_0001>
module attributes {stable_mosaic.version = 11 : i64} {
  func.func @_swish_kernel(%arg0: i32, %arg1: memref<1x2048xf32, #tpu.memory_space<vmem>>, %arg2: memref<1x2048xf32, #tpu.memory_space<vmem>>) attributes {dimension_semantics = [#tpu.dimension_semantics<parallel>], iteration_bounds = array<i64: 1>, scalar_prefetch = 0 : i64, scratch_operands = 0 : i64, tpu.core_type = #tpu.core_type<tc>, window_params = [{transform_indices = @transform_0, window_bounds = array<i64: 1, 2048>}, {transform_indices = @transform_1, window_bounds = array<i64: 1, 2048>}]} {
    %c0 = arith.constant 0 : index
    %c0_0 = arith.constant 0 : index
    %0 = vector.load %arg1[%c0, %c0_0] : memref<1x2048xf32, #tpu.memory_space<vmem>>, vector<1x2048xf32>
    %cst = arith.constant 5.000000e-01 : f32
    %1 = vector.broadcast %cst : f32 to vector<1x2048xf32>
    %2 = arith.mulf %1, %0 : vector<1x2048xf32>
    %3 = math.tanh %2 : vector<1x2048xf32>
    %cst_1 = arith.constant 1.000000e+00 : f32
    %4 = vector.broadcast %cst_1 : f32 to vector<1x2048xf32>
    %5 = arith.addf %3, %4 : vector<1x2048xf32>
    %cst_2 = arith.constant 5.000000e-01 : f32
    %6 = vector.broadcast %cst_2 : f32 to vector<1x2048xf32>
    %7 = arith.mulf %6, %5 : vector<1x2048xf32>
    %8 = arith.mulf %0, %7 : vector<1x2048xf32>
    %c0_3 = arith.constant 0 : index
    %c0_4 = arith.constant 0 : index
    %9 = vector.load %arg2[%c0_3, %c0_4] : memref<1x2048xf32, #tpu.memory_space<vmem>>, vector<1x2048xf32>
    tpu.vector_store %arg2[%c0_3, %c0_4], %8 {strides = array<i32>} : memref<1x2048xf32, #tpu.memory_space<vmem>>, vector<1x2048xf32>,
    return
  }
  func.func @transform_0(%arg0: i32) -> (i32, i32) {
    %c0_i32 = arith.constant 0 : i32
    %c0_i32_0 = arith.constant 0 : i32
    return %arg0, %c0_i32 : i32, i32
  }
  func.func @transform_1(%arg0: i32) -> (i32, i32) {
    %c0_i32 = arith.constant 0 : i32
    %c0_i32_0 = arith.constant 0 : i32
    return %arg0, %c0_i32 : i32, i32
  }
}

</mosaic_0001>

<bundles_post_ra>
// kernel: tpu_custom_call.1
= control target key start
LH: loop header
LB: loop body
LE: loop exit
PB: predicated region body
PF: predicated region fallthrough
CT: control target
= control target key end

     0   :  { %6 = vsyncpa [#allocation3], 0  ;;  %s140_s0 = inlined_call_operand.hbm [shape: f32[1,2048], index: 0, kind: input, shape index: {}]   ;;  %s141_s1 = inlined_call_operand.hbm [shape: f32[1,2048], index: 1, kind: output, shape index: {}]  }
   0x1   :  { %7 = vsyncpa [#allocation4], 0  ;;  %s104_s6 = smov [#allocation2]   ;;  %s56_s10 = scalar_lea.hbm %s140_s0, 256 }
   0x2   :  { %s14_s7 = sshll.u32 %s104_s6, 4  ;;  %p57_p0 = scmp.ne.s32.totalorder %s140_s0, %s56_s10  ;;  %s15_s7 = int_to_ptr.vmem [resolvable:$true] %s14_s7 }
   0x3   :  { %p60_p1 = scmp.lt.u32.totalorder %s56_s10, %s140_s0 }
   0x5   :  { %p62_p2 = pnand %p60_p1, %p57_p0 }
   0x7   :  { %65 = shalt.err (!%p62_p2)
}
   0x8   :  { %s66_s15 = scalar_lea.vmem %s15_s7, 256  ;;  %p71_p4 = scmp.lt.s32.totalorder %s15_s7, %s15_s7 }
   0x9   :  { %p67_p3 = scmp.ne.s32.totalorder %s15_s7, %s66_s15  ;;  %p72_p5 = scmp.lt.s32.totalorder %s66_s15, %s66_s15 }
   0xb   :  { %p73_p6 = por %p72_p5, %p71_p4 }
   0xd   :  { %p74_p7 = pnand %p73_p6, %p67_p3 }
   0xf   :  { %77 = shalt.err (!%p74_p7)
}
  0x10   :  { %17 = dma.hbm_to_vmem [thread:$0]  %s140_s0, 256, %s15_s7, [#allocation3]  }
  0x11   :  { %100 = dma.done.wait [#allocation3], 256  }
  0x12   :  { %101 = vsyncadd [#allocation3], 4294967040  ;;  %v21_v0 = vld [vmem:[#allocation2] sm:$0xff]  ;;  %v22_v1 = vld [vmem:[#allocation2 + $0x8] sm:$0xff]  ;;  %s105_s18 = smov [#allocation5]  }
  0x13   :  { %v23_v2 = vmul.f32 0.5, %v21_v0  ;;  %v24_v3 = vmul.f32 0.5, %v22_v1  ;;  %s41_s19 = sshll.u32 %s105_s18, 4  ;;  %s42_s19 = int_to_ptr.vmem [resolvable:$true] %s41_s19 }
  0x14   :  { %s78_s0 = scalar_lea.vmem %s42_s19, 256  ;;  %p83_p9 = scmp.lt.s32.totalorder %s42_s19, %s42_s19 }
  0x15   :  { %52 = vtanh.f32 %v23_v2  ;;  %p79_p8 = scmp.ne.s32.totalorder %s42_s19, %s78_s0  ;;  %p84_p10 = scmp.lt.s32.totalorder %s78_s0, %s78_s0 }
  0x16   :  { %54 = vtanh.f32 %v24_v3 }
  0x17   :  { %p85_p11 = por %p84_p10, %p83_p9 }
  0x19   :  { %p86_p12 = pnand %p85_p11, %p79_p8 }
  0x1f   :  { %v53_v4 = vpop.eup %52 }
  0x20   :  { %v55_v5 = vpop.eup %54  ;;  %v27_v6 = vadd.f32 1.0, %v53_v4 }
  0x21   :  { %v28_v7 = vadd.f32 1.0, %v55_v5 }
  0x22   :  { %v29_v8 = vmul.f32 0.5, %v27_v6 }
  0x23   :  { %v30_v9 = vmul.f32 0.5, %v28_v7 }
  0x24   :  { %v31_v10 = vmul.f32 %v29_v8, %v21_v0 }
  0x25   :  { %v32_v11 = vmul.f32 %v30_v9, %v22_v1 }
  0x26   :  { %33 = vst [vmem:[#allocation5] sm:$0xff] %v31_v10 }
  0x27   :  { %34 = vst [vmem:[#allocation5 + $0x8] sm:$0xff] %v32_v11 }
  0x28   :  { %89 = shalt.err (!%p86_p12)
}
  0x29   :  { %s90_s22 = scalar_lea.hbm %s141_s1, 256 }
  0x2a   :  { %p91_p13 = scmp.ne.s32.totalorder %s141_s1, %s90_s22  ;;  %p94_p0 = scmp.lt.u32.totalorder %s90_s22, %s141_s1 }
  0x2c   :  { %p96_p1 = pnand %p94_p0, %p91_p13 }
  0x2e   :  { %99 = shalt.err (!%p96_p1)
}
  0x2f   :  { %44 = dma.vmem_to_hbm [thread:$0]  %s42_s19, 256, %s141_s1, [#allocation4]  }
  0x30   :  { %102 = dma.done.wait [#allocation4], 256  }
  0x31   :  { %103 = vsyncadd [#allocation4], 4294967040 }
  0x32   :  { %48 = vsyncpa [#allocation3], 1 }
  0x33   :  { %49 = vsyncpa [#allocation4], 1 }

</bundles_post_ra>
